<compile_context>
chip_gen: v6e
topology: v6e:2x2x1
jax: 0.10.0
libtpu: 0.0.40
codegen_flags: <defaults>
</compile_context>

<pallas_src>
import functools

import jax
import jax.numpy as jnp
from jax import lax
from jax.experimental import pallas as pl
from jax.experimental.pallas import tpu as pltpu

K = 5        # top-k neighbours (module default)
QB = 8       # queries per grid step (one f32 vreg sublane each)
LANE = 128   # TPU lane width


def _knn_kernel(q_ref, w_ref, refs_ref, out_ref, *, k, rank_on_weighted_sims):
    """One grid step == QB queries (grid axis 0 = query blocks, 'parallel').

    q_ref    : VMEM (QB, 3)      f32  [dist, qty, bid] per query
    w_ref    : SMEM (3,)         f32  learned feature weights
    refs_ref : VMEM (5, N_pad)   f32  rows = [dist, qty, bid, price, pad_bias]
                                      pad_bias = 0 valid columns, -inf padding
    out_ref  : VMEM (QB, 1)      f32  predicted price per query
    """
    n_pad = refs_ref.shape[1]
    qb = q_ref.shape[0]
    neg_inf = jnp.float32(-jnp.inf)

    prices = refs_ref[3:4, :]                                   # (1, N_pad)
    bias = refs_ref[4:5, :]                                     # (1, N_pad)

    if rank_on_weighted_sims:
        # Non-degenerate variant: drop only the softmax, keep the weighted
        # mean of the 3 feature similarities.  (QB,1) vs (1,N_pad) broadcasts.
        d_sim = -jnp.abs(q_ref[:, 0:1] - refs_ref[0:1, :])      # (QB, N_pad)
        q_sim = -jnp.abs(q_ref[:, 1:2] - refs_ref[1:2, :])
        b_sim = -jnp.abs(q_ref[:, 2:3] - refs_ref[2:3, :])
        sims = (w_ref[0] * d_sim + w_ref[1] * q_sim
                + w_ref[2] * b_sim) * (1.0 / 3.0) + bias        # (QB, N_pad)
    else:
        # Module-faithful: mean(softmax over 3 rows) == exactly 1/3 for every
        # column -> dead exp/max/divide math removed; query-independent.
        sims = bias + jnp.float32(1.0 / 3.0)                    # (1, N_pad)

    # ---- vector-only top-k selection (k tiny -> unrolled) ----
    col = lax.broadcasted_iota(jnp.int32, (qb, n_pad), 1)       # hoisted once
    cur = jnp.broadcast_to(sims, (qb, n_pad))
    picked = jnp.zeros((qb, n_pad), dtype=jnp.float32)
    for _ in range(k):
        m_val = jnp.max(cur, axis=-1, keepdims=True)            # (QB, 1)
        ties = cur == m_val
        idx = jnp.min(jnp.where(ties, col, n_pad),
                      axis=-1, keepdims=True)                   # lowest-index tie-break
        hit = col == idx                                         # one lane per row
        picked = jnp.where(hit, 1.0, picked)
        cur = jnp.where(hit, neg_inf, cur)                       # remove selected

    # ---- weighted price average via two masked lane reductions ----
    # w = 1/(1 - sim + 1e-6); padded columns have sim == -inf -> w == 0.
    w_row = 1.0 / (1.0 - sims + 1e-6)                           # (QB or 1, N_pad)
    wsel = picked * w_row                                       # zero off the top-k
    sum_w = jnp.sum(wsel, axis=-1, keepdims=True)               # (QB, 1)
    sum_wp = jnp.sum(wsel * prices, axis=-1, keepdims=True)     # (QB, 1)
    out_ref[...] = sum_wp / sum_w


def pack_references(ref_dist, ref_qty, ref_bid, ref_prices):
    """Done once at model-load time: pack the four (N,1) reference arrays plus
    a 0/-inf padded-column bias row into one lane-aligned (5, N_pad) f32 slab
    (single resident VMEM block; padded columns can never be selected)."""
    n = int(ref_dist.shape[0])
    n_pad = ((n + LANE - 1) // LANE) * LANE

    def _row(x):
        r = jnp.zeros((n_pad,), dtype=jnp.float32)
        return r.at[:n].set(jnp.asarray(x, jnp.float32).reshape(-1))

    bias = jnp.where(jnp.arange(n_pad) < n, 0.0, -jnp.inf).astype(jnp.float32)
    packed = jnp.stack([_row(ref_dist), _row(ref_qty), _row(ref_bid),
                        _row(ref_prices), bias], axis=0)        # (5, N_pad)
    return packed, n


def _launch(q_blocks, weights, packed_refs, *, k, rank_on_weighted_sims):
    """q_blocks: (B_pad, 3) with B_pad a multiple of QB.  Returns (B_pad,)."""
    b_pad = q_blocks.shape[0]
    n_pad = packed_refs.shape[1]
    kernel = functools.partial(_knn_kernel, k=k,
                               rank_on_weighted_sims=rank_on_weighted_sims)
    out = pl.pallas_call(
        kernel,
        out_shape=jax.ShapeDtypeStruct((b_pad, 1), jnp.float32),
        grid=(b_pad // QB,),
        in_specs=[
            pl.BlockSpec((QB, 3), lambda b: (b, 0)),            # queries (VMEM)
            pl.BlockSpec(memory_space=pltpu.MemorySpace.SMEM),  # weights (3,)
            pl.BlockSpec((5, n_pad), lambda b: (0, 0)),         # refs slab, resident
        ],
        out_specs=pl.BlockSpec((QB, 1), lambda b: (b, 0)),
        compiler_params=pltpu.CompilerParams(
            dimension_semantics=("parallel",)),                 # v7x: both TCs
    )(q_blocks, weights, packed_refs)
    return out[:, 0]


def weighted_knn_forward(queries, weights, packed_refs, n_valid, *, k=K,
                         rank_on_weighted_sims=False):
    """queries: (B, 3) [dist, qty, bid]; returns (B,) predicted prices."""
    queries = jnp.asarray(queries, jnp.float32).reshape(-1, 3)
    weights = jnp.asarray(weights, jnp.float32).reshape(3)
    bsz = queries.shape[0]
    kk = min(k, int(n_valid))

    if not rank_on_weighted_sims:
        # Module-faithful mode is provably query-independent (softmax-mean is
        # exactly 1/3): run one grid step and broadcast to (B,).
        q_block = jnp.zeros((QB, 3), dtype=jnp.float32)
        out = _launch(q_block, weights, packed_refs, k=kk,
                      rank_on_weighted_sims=False)
        return jnp.broadcast_to(out[0], (bsz,))

    b_pad = ((bsz + QB - 1) // QB) * QB
    q_blocks = jnp.zeros((b_pad, 3), dtype=jnp.float32).at[:bsz].set(queries)
    out = _launch(q_blocks, weights, packed_refs, k=kk,
                  rank_on_weighted_sims=True)
    return out[:bsz]


def _reference_forward(query, weights, ref_dist, ref_qty, ref_bid, ref_prices,
                       rank_on_weighted_sims=False):
    """Pure-JAX reference mirroring the PyTorch module for a single query."""
    d_sim = -jnp.abs(query[0] - ref_dist[:, 0])
    q_sim = -jnp.abs(query[1] - ref_qty[:, 0])
    b_sim = -jnp.abs(query[2] - ref_bid[:, 0])
    if rank_on_weighted_sims:
        final_sim = (weights[0] * d_sim + weights[1] * q_sim
                     + weights[2] * b_sim) * (1.0 / 3.0)
    else:
        # torch.mean(torch.softmax(stack(rows), dim=0), dim=0): every softmax
        # column sums to 1, so the row-mean is exactly 1/3 per column.  Using
        # the exact identity keeps the all-tie top-k deterministic (lowest
        # indices first), matching torch.topk / lax.top_k stable tie order.
        final_sim = jnp.full(d_sim.shape, 1.0 / 3.0, dtype=jnp.float32)
    kk = min(K, final_sim.shape[0])
    top_sims, idx = lax.top_k(final_sim, kk)
    top_prices = ref_prices.reshape(-1)[idx]
    w = 1.0 / (1.0 - top_sims + 1e-6)
    w = w / jnp.sum(w)
    return jnp.dot(top_prices, w)


if __name__ == "__main__":
    key = jax.random.PRNGKey(0)
    kq, kd, kt, kb, kp = jax.random.split(key, 5)

    N = 64    # reference points
    B = 16    # batched queries -> 2 grid steps of QB=8 (keeps both v7x TCs busy)

    queries = jax.random.uniform(kq, (B, 3), dtype=jnp.float32) * 10.0
    weights = jnp.ones((3,), dtype=jnp.float32)        # module init: ones(3)

    ref_dist = jax.random.uniform(kd, (N, 1), dtype=jnp.float32) * 10.0
    ref_qty = jax.random.uniform(kt, (N, 1), dtype=jnp.float32) * 10.0
    ref_bid = jax.random.uniform(kb, (N, 1), dtype=jnp.float32) * 10.0
    ref_prices = jax.random.uniform(kp, (N, 1), dtype=jnp.float32) * 100.0

    # one-time (model-load) packing into the lane-aligned layout
    packed_refs, n_valid = pack_references(ref_dist, ref_qty, ref_bid,
                                           ref_prices)

    # ---- module-faithful path (softmax-mean == exact constant 1/3) ----
    pred = weighted_knn_forward(queries, weights, packed_refs, n_valid)
    pred = jax.block_until_ready(pred)
    ref = jnp.stack([
        _reference_forward(queries[i], weights, ref_dist, ref_qty, ref_bid,
                           ref_prices) for i in range(B)])
    assert jnp.allclose(pred, ref, rtol=1e-4, atol=1e-4), (pred, ref)

    # ---- likely-intended ranking on the pre-softmax weighted sims ----
    pred2 = weighted_knn_forward(queries, weights, packed_refs, n_valid,
                                 rank_on_weighted_sims=True)
    pred2 = jax.block_until_ready(pred2)
    ref2 = jnp.stack([
        _reference_forward(queries[i], weights, ref_dist, ref_qty, ref_bid,
                           ref_prices, rank_on_weighted_sims=True)
        for i in range(B)])
    assert jnp.allclose(pred2, ref2, rtol=1e-4, atol=1e-4), (pred2, ref2)

    print("KERNEL_OK")
</pallas_src>

<mosaic_0001>
module attributes {stable_mosaic.version = 11 : i64} {
  func.func @_knn_kernel(%arg0: i32, %arg1: memref<8x3xf32, #tpu.memory_space<vmem>>, %arg2: memref<3xf32, #tpu.memory_space<smem>>, %arg3: memref<5x128xf32, #tpu.memory_space<vmem>>, %arg4: memref<8x1xf32, #tpu.memory_space<vmem>>) attributes {dimension_semantics = [#tpu.dimension_semantics<parallel>], iteration_bounds = array<i64: 1>, scalar_prefetch = 0 : i64, scratch_operands = 0 : i64, tpu.core_type = #tpu.core_type<tc>, window_params = [{transform_indices = @transform_0, window_bounds = array<i64: 8, 3>}, {transform_indices = @transform_1, window_bounds = array<i64: 3>}, {pipeline_mode = #tpu.pipeline_mode<synchronous>, transform_indices = @transform_2, window_bounds = array<i64: 5, 128>}, {transform_indices = @transform_3, window_bounds = array<i64: 8, 1>}]} {
    %c3 = arith.constant 3 : index
    %c0 = arith.constant 0 : index
    %0 = vector.load %arg3[%c3, %c0] : memref<5x128xf32, #tpu.memory_space<vmem>>, vector<1x128xf32>
    %c4 = arith.constant 4 : index
    %c0_0 = arith.constant 0 : index
    %1 = vector.load %arg3[%c4, %c0_0] : memref<5x128xf32, #tpu.memory_space<vmem>>, vector<1x128xf32>
    %cst = arith.constant 0.333333343 : f32
    %2 = vector.broadcast %cst : f32 to vector<1x128xf32>
    %3 = arith.addf %1, %2 : vector<1x128xf32>
    %4 = tpu.iota {dimensions = array<i32: 1>} : vector<8x128xi32>
    %5 = vector.shape_cast %3 : vector<1x128xf32> to vector<1x128xf32>
    %6 = vector.broadcast %5 : vector<1x128xf32> to vector<8x128xf32>
    %cst_1 = arith.constant 0.000000e+00 : f32
    %7 = vector.broadcast %cst_1 : f32 to vector<8x128xf32>
    %cst_2 = arith.constant dense<0xFF800000> : vector<8xf32>
    %8 = vector.multi_reduction <maximumf>, %6, %cst_2 [1] : vector<8x128xf32> to vector<8xf32>
    %9 = vector.shape_cast %8 : vector<8xf32> to vector<8x1xf32>
    %10 = vector.broadcast %9 : vector<8x1xf32> to vector<8x128xf32>
    %11 = arith.cmpf oeq, %6, %10 : vector<8x128xf32>
    %c128_i32 = arith.constant 128 : i32
    %12 = vector.broadcast %c128_i32 : i32 to vector<8x128xi32>
    %13 = arith.select %11, %4, %12 : vector<8x128xi1>, vector<8x128xi32>
    %cst_3 = arith.constant dense<2147483647> : vector<8xi32>
    %14 = vector.multi_reduction <minsi>, %13, %cst_3 [1] : vector<8x128xi32> to vector<8xi32>
    %15 = vector.shape_cast %14 : vector<8xi32> to vector<8x1xi32>
    %16 = vector.broadcast %15 : vector<8x1xi32> to vector<8x128xi32>
    %17 = arith.cmpi eq, %4, %16 : vector<8x128xi32>
    %cst_4 = arith.constant 1.000000e+00 : f32
    %18 = vector.broadcast %cst_4 : f32 to vector<8x128xf32>
    %19 = arith.select %17, %18, %7 : vector<8x128xi1>, vector<8x128xf32>
    %cst_5 = arith.constant 0xFF800000 : f32
    %20 = vector.broadcast %cst_5 : f32 to vector<8x128xf32>
    %21 = arith.select %17, %20, %6 : vector<8x128xi1>, vector<8x128xf32>
    %cst_6 = arith.constant dense<0xFF800000> : vector<8xf32>
    %22 = vector.multi_reduction <maximumf>, %21, %cst_6 [1] : vector<8x128xf32> to vector<8xf32>
    %23 = vector.shape_cast %22 : vector<8xf32> to vector<8x1xf32>
    %24 = vector.broadcast %23 : vector<8x1xf32> to vector<8x128xf32>
    %25 = arith.cmpf oeq, %21, %24 : vector<8x128xf32>
    %c128_i32_7 = arith.constant 128 : i32
    %26 = vector.broadcast %c128_i32_7 : i32 to vector<8x128xi32>
    %27 = arith.select %25, %4, %26 : vector<8x128xi1>, vector<8x128xi32>
    %cst_8 = arith.constant dense<2147483647> : vector<8xi32>
    %28 = vector.multi_reduction <minsi>, %27, %cst_8 [1] : vector<8x128xi32> to vector<8xi32>
    %29 = vector.shape_cast %28 : vector<8xi32> to vector<8x1xi32>
    %30 = vector.broadcast %29 : vector<8x1xi32> to vector<8x128xi32>
    %31 = arith.cmpi eq, %4, %30 : vector<8x128xi32>
    %cst_9 = arith.constant 1.000000e+00 : f32
    %32 = vector.broadcast %cst_9 : f32 to vector<8x128xf32>
    %33 = arith.select %31, %32, %19 : vector<8x128xi1>, vector<8x128xf32>
    %cst_10 = arith.constant 0xFF800000 : f32
    %34 = vector.broadcast %cst_10 : f32 to vector<8x128xf32>
    %35 = arith.select %31, %34, %21 : vector<8x128xi1>, vector<8x128xf32>
    %cst_11 = arith.constant dense<0xFF800000> : vector<8xf32>
    %36 = vector.multi_reduction <maximumf>, %35, %cst_11 [1] : vector<8x128xf32> to vector<8xf32>
    %37 = vector.shape_cast %36 : vector<8xf32> to vector<8x1xf32>
    %38 = vector.broadcast %37 : vector<8x1xf32> to vector<8x128xf32>
    %39 = arith.cmpf oeq, %35, %38 : vector<8x128xf32>
    %c128_i32_12 = arith.constant 128 : i32
    %40 = vector.broadcast %c128_i32_12 : i32 to vector<8x128xi32>
    %41 = arith.select %39, %4, %40 : vector<8x128xi1>, vector<8x128xi32>
    %cst_13 = arith.constant dense<2147483647> : vector<8xi32>
    %42 = vector.multi_reduction <minsi>, %41, %cst_13 [1] : vector<8x128xi32> to vector<8xi32>
    %43 = vector.shape_cast %42 : vector<8xi32> to vector<8x1xi32>
    %44 = vector.broadcast %43 : vector<8x1xi32> to vector<8x128xi32>
    %45 = arith.cmpi eq, %4, %44 : vector<8x128xi32>
    %cst_14 = arith.constant 1.000000e+00 : f32
    %46 = vector.broadcast %cst_14 : f32 to vector<8x128xf32>
    %47 = arith.select %45, %46, %33 : vector<8x128xi1>, vector<8x128xf32>
    %cst_15 = arith.constant 0xFF800000 : f32
    %48 = vector.broadcast %cst_15 : f32 to vector<8x128xf32>
    %49 = arith.select %45, %48, %35 : vector<8x128xi1>, vector<8x128xf32>
    %cst_16 = arith.constant dense<0xFF800000> : vector<8xf32>
    %50 = vector.multi_reduction <maximumf>, %49, %cst_16 [1] : vector<8x128xf32> to vector<8xf32>
    %51 = vector.shape_cast %50 : vector<8xf32> to vector<8x1xf32>
    %52 = vector.broadcast %51 : vector<8x1xf32> to vector<8x128xf32>
    %53 = arith.cmpf oeq, %49, %52 : vector<8x128xf32>
    %c128_i32_17 = arith.constant 128 : i32
    %54 = vector.broadcast %c128_i32_17 : i32 to vector<8x128xi32>
    %55 = arith.select %53, %4, %54 : vector<8x128xi1>, vector<8x128xi32>
    %cst_18 = arith.constant dense<2147483647> : vector<8xi32>
    %56 = vector.multi_reduction <minsi>, %55, %cst_18 [1] : vector<8x128xi32> to vector<8xi32>
    %57 = vector.shape_cast %56 : vector<8xi32> to vector<8x1xi32>
    %58 = vector.broadcast %57 : vector<8x1xi32> to vector<8x128xi32>
    %59 = arith.cmpi eq, %4, %58 : vector<8x128xi32>
    %cst_19 = arith.constant 1.000000e+00 : f32
    %60 = vector.broadcast %cst_19 : f32 to vector<8x128xf32>
    %61 = arith.select %59, %60, %47 : vector<8x128xi1>, vector<8x128xf32>
    %cst_20 = arith.constant 0xFF800000 : f32
    %62 = vector.broadcast %cst_20 : f32 to vector<8x128xf32>
    %63 = arith.select %59, %62, %49 : vector<8x128xi1>, vector<8x128xf32>
    %cst_21 = arith.constant dense<0xFF800000> : vector<8xf32>
    %64 = vector.multi_reduction <maximumf>, %63, %cst_21 [1] : vector<8x128xf32> to vector<8xf32>
    %65 = vector.shape_cast %64 : vector<8xf32> to vector<8x1xf32>
    %66 = vector.broadcast %65 : vector<8x1xf32> to vector<8x128xf32>
    %67 = arith.cmpf oeq, %63, %66 : vector<8x128xf32>
    %c128_i32_22 = arith.constant 128 : i32
    %68 = vector.broadcast %c128_i32_22 : i32 to vector<8x128xi32>
    %69 = arith.select %67, %4, %68 : vector<8x128xi1>, vector<8x128xi32>
    %cst_23 = arith.constant dense<2147483647> : vector<8xi32>
    %70 = vector.multi_reduction <minsi>, %69, %cst_23 [1] : vector<8x128xi32> to vector<8xi32>
    %71 = vector.shape_cast %70 : vector<8xi32> to vector<8x1xi32>
    %72 = vector.broadcast %71 : vector<8x1xi32> to vector<8x128xi32>
    %73 = arith.cmpi eq, %4, %72 : vector<8x128xi32>
    %cst_24 = arith.constant 1.000000e+00 : f32
    %74 = vector.broadcast %cst_24 : f32 to vector<8x128xf32>
    %75 = arith.select %73, %74, %61 : vector<8x128xi1>, vector<8x128xf32>
    %cst_25 = arith.constant 1.000000e+00 : f32
    %76 = vector.broadcast %cst_25 : f32 to vector<1x128xf32>
    %77 = arith.subf %76, %3 : vector<1x128xf32>
    %cst_26 = arith.constant 9.99999997E-7 : f32
    %78 = vector.broadcast %cst_26 : f32 to vector<1x128xf32>
    %79 = arith.addf %77, %78 : vector<1x128xf32>
    %cst_27 = arith.constant 1.000000e+00 : f32
    %80 = vector.broadcast %cst_27 : f32 to vector<1x128xf32>
    %81 = arith.divf %80, %79 : vector<1x128xf32>
    %82 = vector.broadcast %81 : vector<1x128xf32> to vector<8x128xf32>
    %83 = arith.mulf %75, %82 : vector<8x128xf32>
    %cst_28 = arith.constant dense<0.000000e+00> : vector<8xf32>
    %84 = vector.multi_reduction <add>, %83, %cst_28 [1] : vector<8x128xf32> to vector<8xf32>
    %85 = vector.shape_cast %84 : vector<8xf32> to vector<8x1xf32>
    %86 = vector.broadcast %0 : vector<1x128xf32> to vector<8x128xf32>
    %87 = arith.mulf %83, %86 : vector<8x128xf32>
    %cst_29 = arith.constant dense<0.000000e+00> : vector<8xf32>
    %88 = vector.multi_reduction <add>, %87, %cst_29 [1] : vector<8x128xf32> to vector<8xf32>
    %89 = vector.shape_cast %88 : vector<8xf32> to vector<8x1xf32>
    %90 = arith.divf %89, %85 : vector<8x1xf32>
    %c0_30 = arith.constant 0 : index
    %c0_31 = arith.constant 0 : index
    %91 = vector.load %arg4[%c0_30, %c0_31] : memref<8x1xf32, #tpu.memory_space<vmem>>, vector<8x1xf32>
    tpu.vector_store %arg4[%c0_30, %c0_31], %90 {strides = array<i32>} : memref<8x1xf32, #tpu.memory_space<vmem>>, vector<8x1xf32>,
    return
  }
  func.func @transform_0(%arg0: i32) -> (i32, i32) {
    %c0_i32 = arith.constant 0 : i32
    %c0_i32_0 = arith.constant 0 : i32
    return %arg0, %c0_i32 : i32, i32
  }
  func.func @transform_1(%arg0: i32) -> i32 {
    %c0_i32 = arith.constant 0 : i32
    %c0_i32_0 = arith.constant 0 : i32
    return %c0_i32 : i32
  }
  func.func @transform_2(%arg0: i32) -> (i32, i32) {
    %c0_i32 = arith.constant 0 : i32
    %c0_i32_0 = arith.constant 0 : i32
    %c0_i32_1 = arith.constant 0 : i32
    return %c0_i32, %c0_i32_0 : i32, i32
  }
  func.func @transform_3(%arg0: i32) -> (i32, i32) {
    %c0_i32 = arith.constant 0 : i32
    %c0_i32_0 = arith.constant 0 : i32
    return %arg0, %c0_i32 : i32, i32
  }
}

</mosaic_0001>

<bundles_post_ra>
// kernel: tpu_custom_call.1
= control target key start
LH: loop header
LB: loop body
LE: loop exit
PB: predicated region body
PF: predicated region fallthrough
CT: control target
= control target key end

     0   :  { %8 = vsyncpa [#allocation3], 0  ;;  %s249_s0 = inlined_call_operand.vmem [shape: f32[8,3], index: 0, kind: input, shape index: {}]   ;;  %s250_s1 = inlined_call_operand.vmem [shape: f32[3], index: 1, kind: input, shape index: {}]   ;;  %s251_s2 = inlined_call_operand.vmem [shape: f32[5,128], index: 2, kind: input, shape index: {}]   ;;  %s252_s3 = inlined_call_operand.vmem [shape: f32[8,1], index: 3, kind: output, shape index: {}]  }
   0x1   :  { %s17_s14 = sshll.u32 %s250_s1, 4  ;;  %s18_s14 = int_to_ptr.vmem [resolvable:$true] %s17_s14 }
   0x2   :  { %s174_s15 = scalar_lea.vmem %s18_s14, 16  ;;  %p179_p1 = scmp.lt.s32.totalorder %s18_s14, %s18_s14 }
   0x3   :  { %p175_p0 = scmp.ne.s32.totalorder %s18_s14, %s174_s15  ;;  %p180_p2 = scmp.lt.s32.totalorder %s174_s15, %s174_s15 }
   0x5   :  { %p181_p3 = por %p180_p2, %p179_p1 }
   0x7   :  { %p182_p4 = pnand %p181_p3, %p175_p0 }
   0x9   :  { %185 = shalt.err (!%p182_p4)
}
   0xa   :  { %s188_s0 = smov [#allocation2]  }
   0xb   :  { %20 = dma.vmem_to_smem %s18_s14, 16, %s188_s0, [#allocation3]  }
   0xc   :  { %186 = dma.done.wait [#allocation3], 16  }
   0xd   :  { %187 = vsyncadd [#allocation3], 4294967280 }
   0xe   :  { %26 = sfence }
   0xf   :  { %v28_v0 = vld [vmem:[%s251_s2 + $0x4] sm:$0x1]  ;;  %v30_v1 = vlaneseq  ;;  %v189_v34 = vmov 0.0   ;;  %vm160_vm15 = vcmask 7168  }
  0x10   :  { %v216_v2 = vadd.f32 0.33333334, %v28_v0 }
  0x11   :  { %v218_v3 = vshrl.u32 %v30_v1, 7  ;;  %v224_v6 = vand.u32 127, %v30_v1 }
  0x13   :  { %v34_v4 = vsub.s32 0, %v218_v3 }
  0x15   :  { %v35_v5 = vrot.slane %v216_v2, %v34_v4 }
  0x17   :  { %36 = vmax.xlane.f32.xlu0 %v35_v5 }
  0xa0   :  { %v37_v7 = vpop.xlane.xlu0 %36 }
  0xa1   :  { %vm38_vm0 = vcmp.eq.f32.partialorder %v35_v5, %v37_v7 }
  0xa2   :  { %v39_v8 = vsel %vm38_vm0, %v224_v6, 128 }
  0xa3   :  { %v41_v9 = vshra.s32 %v39_v8, 16  ;;  %v40_v11 = vand.u32 65535, %v39_v8 }
  0xa5   :  { %v43_v10 = vcvt.s32.f32 %v41_v9  ;;  %v42_v13 = vcvt.s32.f32 %v40_v11 }
  0xa7   :  { %44 = vmin.xlane.f32.xlu0 %v43_v10 }
 0x130   :  { %v45_v12 = vpop.xlane.xlu0 %44 }
 0x131   :  { %vm46_vm1 = vcmp.eq.f32.partialorder %v43_v10, %v45_v12  ;;  %v51_v15 = vcvt.f32.s32 %v45_v12 }
 0x132   :  { %v47_v14 = vsel %vm46_vm1, %v42_v13, inf }
 0x133   :  { %48 = vmin.xlane.f32.xlu1 %v47_v14  ;;  %v52_v17 = vshll.u32 %v51_v15, 16 }
 0x1bc   :  { %v49_v16 = vpop.xlane.xlu1 %48 }
 0x1bd   :  { %v50_v18 = vcvt.f32.s32 %v49_v16  ;;  %v140_v16 = vsub.f32 1.0, %v216_v2 }
 0x1bf   :  { %v53_v19 = vadd.s32 %v52_v17, %v50_v18  ;;  %v141_v17 = vadd.f32 1e-06, %v140_v16 }
 0x1c1   :  { %vm54_vm2 = vcmp.eq.s32.totalorder %v224_v6, %v53_v19  ;;  %170 = vrcp.f32 %v141_v17 }
 0x1c2   :  { %v56_v20 = vsel %vm54_vm2, -inf, %v35_v5  ;;  %v55_v35 = vsel %vm54_vm2, 1.0, %v189_v34 }
 0x1c3   :  { %57 = vmax.xlane.f32.xlu1 %v56_v20 }
 0x1ce   :  { %v171_v19 = vpop.eup %170 }
 0x24c   :  { %v58_v21 = vpop.xlane.xlu1 %57 }
 0x24d   :  { %vm59_vm3 = vcmp.eq.f32.partialorder %v56_v20, %v58_v21 }
 0x24e   :  { %v60_v22 = vsel %vm59_vm3, %v224_v6, 128 }
 0x24f   :  { %v62_v23 = vshra.s32 %v60_v22, 16  ;;  %v61_v25 = vand.u32 65535, %v60_v22 }
 0x251   :  { %v64_v24 = vcvt.s32.f32 %v62_v23  ;;  %v63_v27 = vcvt.s32.f32 %v61_v25 }
 0x253   :  { %65 = vmin.xlane.f32.xlu0 %v64_v24 }
 0x2dc   :  { %v66_v26 = vpop.xlane.xlu0 %65 }
 0x2dd   :  { %vm67_vm4 = vcmp.eq.f32.partialorder %v64_v24, %v66_v26  ;;  %v72_v29 = vcvt.f32.s32 %v66_v26  ;;  %v147_v24 = vrot.slane %v171_v19, %v34_v4  ;;  %v167_v26 = vld [vmem:[%s251_s2 + $0x3] ss:$0 sm:$0xff] }
 0x2de   :  { %v68_v28 = vsel %vm67_vm4, %v63_v27, inf }
 0x2df   :  { %69 = vmin.xlane.f32.xlu1 %v68_v28  ;;  %v73_v31 = vshll.u32 %v72_v29, 16 }
 0x368   :  { %v70_v30 = vpop.xlane.xlu1 %69 }
 0x369   :  { %v71_v32 = vcvt.f32.s32 %v70_v30 }
 0x36b   :  { %v74_v33 = vadd.s32 %v73_v31, %v71_v32 }
 0x36d   :  { %vm75_vm5 = vcmp.eq.s32.totalorder %v224_v6, %v74_v33 }
 0x36e   :  { %v77_v36 = vsel %vm75_vm5, -inf, %v56_v20  ;;  %v76_v37 = vsel %vm75_vm5, 1.0, %v55_v35 }
 0x36f   :  { %78 = vmax.xlane.f32.xlu0 %v77_v36 }
 0x3f8   :  { %v79_v38 = vpop.xlane.xlu0 %78 }
 0x3f9   :  { %vm80_vm6 = vcmp.eq.f32.partialorder %v77_v36, %v79_v38 }
 0x3fa   :  { %v81_v39 = vsel %vm80_vm6, %v224_v6, 128 }
 0x3fb   :  { %v83_v40 = vshra.s32 %v81_v39, 16  ;;  %v82_v42 = vand.u32 65535, %v81_v39 }
 0x3fd   :  { %v85_v41 = vcvt.s32.f32 %v83_v40  ;;  %v84_v44 = vcvt.s32.f32 %v82_v42 }
 0x3ff   :  { %86 = vmin.xlane.f32.xlu1 %v85_v41 }
 0x488   :  { %v87_v43 = vpop.xlane.xlu1 %86 }
 0x489   :  { %vm88_vm7 = vcmp.eq.f32.partialorder %v85_v41, %v87_v43  ;;  %v93_v46 = vcvt.f32.s32 %v87_v43 }
 0x48a   :  { %v89_v45 = vsel %vm88_vm7, %v84_v44, inf }
 0x48b   :  { %90 = vmin.xlane.f32.xlu0 %v89_v45  ;;  %v94_v48 = vshll.u32 %v93_v46, 16 }
 0x514   :  { %v91_v47 = vpop.xlane.xlu0 %90 }
 0x515   :  { %v92_v49 = vcvt.f32.s32 %v91_v47 }
 0x517   :  { %v95_v50 = vadd.s32 %v94_v48, %v92_v49 }
 0x519   :  { %vm96_vm8 = vcmp.eq.s32.totalorder %v224_v6, %v95_v50 }
 0x51a   :  { %v98_v51 = vsel %vm96_vm8, -inf, %v77_v36  ;;  %v97_v52 = vsel %vm96_vm8, 1.0, %v76_v37 }
 0x51b   :  { %99 = vmax.xlane.f32.xlu1 %v98_v51 }
 0x5a4   :  { %v100_v53 = vpop.xlane.xlu1 %99 }
 0x5a5   :  { %vm101_vm9 = vcmp.eq.f32.partialorder %v98_v51, %v100_v53 }
 0x5a6   :  { %v102_v54 = vsel %vm101_vm9, %v224_v6, 128 }
 0x5a7   :  { %v104_v55 = vshra.s32 %v102_v54, 16  ;;  %v103_v57 = vand.u32 65535, %v102_v54 }
 0x5a9   :  { %v106_v56 = vcvt.s32.f32 %v104_v55  ;;  %v105_v59 = vcvt.s32.f32 %v103_v57 }
 0x5ab   :  { %107 = vmin.xlane.f32.xlu0 %v106_v56 }
 0x634   :  { %v108_v58 = vpop.xlane.xlu0 %107 }
 0x635   :  { %vm109_vm10 = vcmp.eq.f32.partialorder %v106_v56, %v108_v58  ;;  %v114_v61 = vcvt.f32.s32 %v108_v58 }
 0x636   :  { %v110_v60 = vsel %vm109_vm10, %v105_v59, inf }
 0x637   :  { %111 = vmin.xlane.f32.xlu1 %v110_v60  ;;  %v115_v63 = vshll.u32 %v114_v61, 16 }
 0x6c0   :  { %v112_v62 = vpop.xlane.xlu1 %111 }
 0x6c1   :  { %v113_v0 = vcvt.f32.s32 %v112_v62 }
 0x6c3   :  { %v116_v1 = vadd.s32 %v115_v63, %v113_v0 }
 0x6c5   :  { %vm117_vm11 = vcmp.eq.s32.totalorder %v224_v6, %v116_v1 }
 0x6c6   :  { %v119_v5 = vsel %vm117_vm11, -inf, %v98_v51  ;;  %v118_v7 = vsel %vm117_vm11, 1.0, %v97_v52 }
 0x6c7   :  { %120 = vmax.xlane.f32.xlu0 %v119_v5 }
 0x750   :  { %v121_v8 = vpop.xlane.xlu0 %120 }
 0x751   :  { %vm122_vm12 = vcmp.eq.f32.partialorder %v119_v5, %v121_v8 }
 0x752   :  { %v123_v9 = vsel %vm122_vm12, %v224_v6, 128 }
 0x753   :  { %v125_v10 = vshra.s32 %v123_v9, 16  ;;  %v124_v12 = vand.u32 65535, %v123_v9 }
 0x755   :  { %v127_v11 = vcvt.s32.f32 %v125_v10  ;;  %v126_v14 = vcvt.s32.f32 %v124_v12 }
 0x757   :  { %128 = vmin.xlane.f32.xlu1 %v127_v11 }
 0x7e0   :  { %v129_v13 = vpop.xlane.xlu1 %128 }
 0x7e1   :  { %vm130_vm13 = vcmp.eq.f32.partialorder %v127_v11, %v129_v13  ;;  %v135_v18 = vcvt.f32.s32 %v129_v13 }
 0x7e2   :  { %v131_v15 = vsel %vm130_vm13, %v126_v14, inf }
 0x7e3   :  { %132 = vmin.xlane.f32.xlu0 %v131_v15  ;;  %v136_v21 = vshll.u32 %v135_v18, 16 }
 0x86c   :  { %v133_v20 = vpop.xlane.xlu0 %132 }
 0x86d   :  { %v134_v22 = vcvt.f32.s32 %v133_v20 }
 0x86f   :  { %v137_v23 = vadd.s32 %v136_v21, %v134_v22 }
 0x871   :  { %vm138_vm14 = vcmp.eq.s32.totalorder %v224_v6, %v137_v23 }
 0x872   :  { %v139_v25 = vsel %vm138_vm14, 1.0, %v118_v7 }
 0x873   :  { %v148_v27 = vmul.f32 %v147_v24, %v139_v25 }
 0x875   :  { %149 = vadd.xlane.f32.xlu1 %v148_v27  ;;  %v155_v2 = vmul.f32 %v167_v26, %v148_v27 }
 0x877   :  { %156 = vadd.xlane.f32.xlu0 %v155_v2 }
 0x8fe   :  { %v150_v28 = vpop.xlane.xlu1 %149 }
 0x8ff   :  { %172 = vrcp.f32 %v150_v28 }
 0x900   :  { %v157_v30 = vpop.xlane.xlu0 %156 }
 0x90c   :  { %v173_v29 = vpop.eup %172 }
 0x90d   :  { %v159_v31 = vmul.f32 %v173_v29, %v157_v30 }
 0x90f   :  { %161 = vst.msk [vmem:[%s252_s3] sm:$0xff] %vm160_vm15, %v159_v31 }
 0x910   :  { %166 = vsyncpa [#allocation3], 1 }

</bundles_post_ra>
